<compile_context>
chip_gen: v7x
topology: tpu7x:2x2x1
jax: 0.10.0
libtpu: 0.0.40
codegen_flags: <defaults>
</compile_context>

<pallas_src>
import functools

import jax
import jax.numpy as jnp
from jax.experimental import pallas as pl
from jax.experimental.pallas import tpu as pltpu

EPS = 1e-5
NEG_SLOPE = 0.1
LANE = 128


def _leaky_relu(x):
    return jnp.where(x >= 0, x, NEG_SLOPE * x)


def _instance_norm_over_t(x2d, batch, time, inv_t):
    # x2d: (B*T, F). Normalize each feature channel (lane) over T, per batch.
    # Two-pass moments (matches PyTorch InstanceNorm1d: biased var, eps=1e-5).
    f = x2d.shape[-1]
    x3 = x2d.reshape(batch, time, f)
    mean = jnp.sum(x3, axis=1, keepdims=True) * inv_t
    centered = x3 - mean
    var = jnp.sum(centered * centered, axis=1, keepdims=True) * inv_t
    out = centered * jax.lax.rsqrt(var + EPS)
    return out.reshape(batch * time, f)


def decoder_kernel(x_ref, w1_ref, w2_ref, w3_ref, b3_ref, y_ref, *,
                   batch, time, inv_t):
    # x_ref: (B, T, 2*F1_in) with lanes = [real | imag]
    x = x_ref[...].reshape(batch * time, x_ref.shape[-1])      # (B*T, 2*F1_in)

    # ---- FC1 (complex as one block matmul) + InstanceNorm + LeakyReLU ----
    h = jnp.dot(x, w1_ref[...], preferred_element_type=jnp.float32)
    h = _leaky_relu(_instance_norm_over_t(h, batch, time, inv_t))

    # ---- FC2 + InstanceNorm + LeakyReLU ----
    g = jnp.dot(h, w2_ref[...], preferred_element_type=jnp.float32)
    g = _leaky_relu(_instance_norm_over_t(g, batch, time, inv_t))

    # ---- FC3 (with bias); output columns are zero-padded to 128 lanes ----
    y = jnp.dot(g, w3_ref[...], preferred_element_type=jnp.float32) + b3_ref[...]
    y_ref[...] = y.reshape(batch, time, y_ref.shape[-1])        # lane-dense store


def _round_up(n, m):
    return (n + m - 1) // m * m


def pack_decoder_params(params):
    """One-time packing of complex weights into real block matrices.

    Call once at init (NOT per forward) so the per-call path has zero
    weight-side concatenate ops.
    """
    def block(wr, wi):
        top = jnp.concatenate([wr, wi], axis=1)
        bot = jnp.concatenate([-wi, wr], axis=1)
        return jnp.concatenate([top, bot], axis=0)

    w1 = block(params["w1r"], params["w1i"])                    # (2F1in, 2F1out)
    w2 = block(params["w2r"], params["w2i"])                    # (2F1out, 2F2out)
    w3 = block(params["w3r"], params["w3i"])                    # (2F2out, 2F3out)
    b3 = jnp.concatenate([params["b3r"], params["b3i"]], axis=-1)

    # Zero-pad the last layer's output columns to a full 128-lane multiple so
    # the kernel's output store is lane-dense (unmasked vst).
    f3_out = params["w3r"].shape[1]
    pad = _round_up(2 * f3_out, LANE) - 2 * f3_out
    if pad:
        w3 = jnp.pad(w3, ((0, 0), (0, pad)))
        b3 = jnp.pad(b3, ((0, 0), (0, pad)))

    return {"w1": w1, "w2": w2, "w3": w3, "b3": b3}


@functools.partial(jax.jit, static_argnames=("f3_out",))
def decoder_forward(xr, xi, packed, *, f3_out):
    """xr, xi: (B, T, F1_in) float32. Returns (yr, yi) of shape (B, f3_out, T)."""
    B, T, f1_in = xr.shape
    w1, w2, w3, b3 = packed["w1"], packed["w2"], packed["w3"], packed["b3"]
    out_lanes = w3.shape[1]

    # Per-call glue (fused by jit): pack real/imag along lanes.
    x_packed = jnp.concatenate([xr, xi], axis=-1)               # (B, T, 2*F1_in)

    kernel = functools.partial(decoder_kernel, batch=B, time=T, inv_t=1.0 / T)
    full = lambda shp: pl.BlockSpec(shp, lambda i, _s=shp: (0,) * len(_s))

    y_packed = pl.pallas_call(
        kernel,
        out_shape=jax.ShapeDtypeStruct((B, T, out_lanes), jnp.float32),
        grid=(1,),                                              # single step: whole problem
        in_specs=[
            full((B, T, 2 * f1_in)),
            full(w1.shape),
            full(w2.shape),
            full(w3.shape),
            full(b3.shape),
        ],
        out_specs=full((B, T, out_lanes)),
        compiler_params=pltpu.CompilerParams(
            dimension_semantics=("arbitrary",)),
    )(x_packed, w1, w2, w3, b3)

    # Split packed lanes + final transpose(1, 2): (B, T, F) -> (B, F, T).
    # Fused by the surrounding jit; padded lanes [2*f3_out:] are dropped here.
    yr = jnp.transpose(y_packed[..., :f3_out], (0, 2, 1))
    yi = jnp.transpose(y_packed[..., f3_out:2 * f3_out], (0, 2, 1))
    return yr, yi


def init_params(key, f1_in, f1_out, f2_out, f3_out):
    ks = jax.random.split(key, 10)
    u = lambda k, shp, fan_in: jax.random.uniform(
        k, shp, jnp.float32, -1.0 / jnp.sqrt(fan_in), 1.0 / jnp.sqrt(fan_in))
    return {
        "w1r": u(ks[0], (f1_in, f1_out), f1_in),
        "w1i": u(ks[1], (f1_in, f1_out), f1_in),
        "w2r": u(ks[2], (f1_out, f2_out), f1_out),
        "w2i": u(ks[3], (f1_out, f2_out), f1_out),
        "w3r": u(ks[4], (f2_out, f3_out), f2_out),
        "w3i": u(ks[5], (f2_out, f3_out), f2_out),
        "b3r": u(ks[6], (1, f3_out), f2_out),
        "b3i": u(ks[7], (1, f3_out), f2_out),
    }


def _reference(xr, xi, p):
    """Pure-JAX reference mirroring the PyTorch forward, for verification."""
    def cdot(ar, ai, wr, wi):
        return ar @ wr - ai @ wi, ar @ wi + ai @ wr

    def inorm(x):  # x: (B, T, F), normalize over T per (B, F)
        m = jnp.mean(x, axis=1, keepdims=True)
        v = jnp.mean((x - m) ** 2, axis=1, keepdims=True)
        return (x - m) / jnp.sqrt(v + EPS)

    act = lambda x: jnp.where(x >= 0, x, NEG_SLOPE * x)

    hr, hi = cdot(xr, xi, p["w1r"], p["w1i"])
    hr, hi = act(inorm(hr)), act(inorm(hi))
    gr, gi = cdot(hr, hi, p["w2r"], p["w2i"])
    gr, gi = act(inorm(gr)), act(inorm(gi))
    yr, yi = cdot(gr, gi, p["w3r"], p["w3i"])
    yr, yi = yr + p["b3r"], yi + p["b3i"]
    return jnp.transpose(yr, (0, 2, 1)), jnp.transpose(yi, (0, 2, 1))


if __name__ == "__main__":
    # cfg: layer1_in=32, layer1_out=64, layer2_in=64, layer2_out=48,
    #      layer3_in=48, layer3_out=32
    B, T = 2, 8
    F1_IN, F1_OUT, F2_OUT, F3_OUT = 32, 64, 48, 32

    key = jax.random.PRNGKey(0)
    k_xr, k_xi, k_p = jax.random.split(key, 3)
    xr = jax.random.normal(k_xr, (B, T, F1_IN), jnp.float32)
    xi = jax.random.normal(k_xi, (B, T, F1_IN), jnp.float32)
    params = init_params(k_p, F1_IN, F1_OUT, F2_OUT, F3_OUT)

    # Hoisted weight packing: done once, outside the per-forward path.
    packed = jax.block_until_ready(pack_decoder_params(params))

    yr, yi = decoder_forward(xr, xi, packed, f3_out=F3_OUT)
    yr = jax.block_until_ready(yr)
    yi = jax.block_until_ready(yi)

    ref_r, ref_i = _reference(xr, xi, params)
    assert yr.shape == (B, F3_OUT, T) and yi.shape == (B, F3_OUT, T)
    assert jnp.allclose(yr, ref_r, atol=2e-4, rtol=2e-4)
    assert jnp.allclose(yi, ref_i, atol=2e-4, rtol=2e-4)

    print("KERNEL_OK")
</pallas_src>

<mosaic_0001>
module attributes {stable_mosaic.version = 11 : i64} {
  func.func @decoder_kernel(%arg0: i32, %arg1: memref<2x8x64xf32, #tpu.memory_space<vmem>>, %arg2: memref<64x128xf32, #tpu.memory_space<vmem>>, %arg3: memref<128x96xf32, #tpu.memory_space<vmem>>, %arg4: memref<96x128xf32, #tpu.memory_space<vmem>>, %arg5: memref<1x128xf32, #tpu.memory_space<vmem>>, %arg6: memref<2x8x128xf32, #tpu.memory_space<vmem>>) attributes {dimension_semantics = [#tpu.dimension_semantics<arbitrary>], iteration_bounds = array<i64: 1>, scalar_prefetch = 0 : i64, scratch_operands = 0 : i64, tpu.core_type = #tpu.core_type<tc>, window_params = [{pipeline_mode = #tpu.pipeline_mode<synchronous>, transform_indices = @transform_0, window_bounds = array<i64: 2, 8, 64>}, {pipeline_mode = #tpu.pipeline_mode<synchronous>, transform_indices = @transform_1, window_bounds = array<i64: 64, 128>}, {pipeline_mode = #tpu.pipeline_mode<synchronous>, transform_indices = @transform_2, window_bounds = array<i64: 128, 96>}, {pipeline_mode = #tpu.pipeline_mode<synchronous>, transform_indices = @transform_3, window_bounds = array<i64: 96, 128>}, {pipeline_mode = #tpu.pipeline_mode<synchronous>, transform_indices = @transform_4, window_bounds = array<i64: 1, 128>}, {pipeline_mode = #tpu.pipeline_mode<synchronous>, transform_indices = @transform_5, window_bounds = array<i64: 2, 8, 128>}]} {
    %c0 = arith.constant 0 : index
    %c0_0 = arith.constant 0 : index
    %c0_1 = arith.constant 0 : index
    %0 = vector.load %arg1[%c0, %c0_0, %c0_1] : memref<2x8x64xf32, #tpu.memory_space<vmem>>, vector<2x8x64xf32>
    %1 = vector.shape_cast %0 : vector<2x8x64xf32> to vector<16x64xf32>
    %c0_2 = arith.constant 0 : index
    %c0_3 = arith.constant 0 : index
    %2 = vector.load %arg2[%c0_2, %c0_3] : memref<64x128xf32, #tpu.memory_space<vmem>>, vector<64x128xf32>
    %cst = arith.constant dense<0.000000e+00> : vector<16x128xf32>
    %3 = tpu.matmul %1, %2, %cst {dimension_numbers = #tpu.dot_dimension_numbers<[1], [0], [0], [1], [0, 0, 1, 1], [], []>} : vector<16x64xf32>, vector<64x128xf32>, vector<16x128xf32> -> vector<16x128xf32>
    %4 = vector.shape_cast %3 : vector<16x128xf32> to vector<2x8x128xf32>
    %cst_4 = arith.constant dense<0.000000e+00> : vector<2x128xf32>
    %5 = vector.multi_reduction <add>, %4, %cst_4 [1] : vector<2x8x128xf32> to vector<2x128xf32>
    %6 = vector.shape_cast %5 : vector<2x128xf32> to vector<2x1x128xf32>
    %cst_5 = arith.constant 1.250000e-01 : f32
    %7 = vector.broadcast %cst_5 : f32 to vector<2x1x128xf32>
    %8 = arith.mulf %6, %7 : vector<2x1x128xf32>
    %9 = vector.broadcast %8 : vector<2x1x128xf32> to vector<2x8x128xf32>
    %10 = arith.subf %4, %9 : vector<2x8x128xf32>
    %11 = arith.mulf %10, %10 : vector<2x8x128xf32>
    %cst_6 = arith.constant dense<0.000000e+00> : vector<2x128xf32>
    %12 = vector.multi_reduction <add>, %11, %cst_6 [1] : vector<2x8x128xf32> to vector<2x128xf32>
    %13 = vector.shape_cast %12 : vector<2x128xf32> to vector<2x1x128xf32>
    %cst_7 = arith.constant 1.250000e-01 : f32
    %14 = vector.broadcast %cst_7 : f32 to vector<2x1x128xf32>
    %15 = arith.mulf %13, %14 : vector<2x1x128xf32>
    %cst_8 = arith.constant 9.99999974E-6 : f32
    %16 = vector.broadcast %cst_8 : f32 to vector<2x1x128xf32>
    %17 = arith.addf %15, %16 : vector<2x1x128xf32>
    %18 = math.rsqrt %17 : vector<2x1x128xf32>
    %19 = vector.broadcast %18 : vector<2x1x128xf32> to vector<2x8x128xf32>
    %20 = arith.mulf %10, %19 : vector<2x8x128xf32>
    %21 = vector.shape_cast %20 : vector<2x8x128xf32> to vector<16x128xf32>
    %cst_9 = arith.constant 0.000000e+00 : f32
    %22 = vector.broadcast %cst_9 : f32 to vector<16x128xf32>
    %23 = arith.cmpf oge, %21, %22 : vector<16x128xf32>
    %cst_10 = arith.constant 1.000000e-01 : f32
    %24 = vector.broadcast %cst_10 : f32 to vector<16x128xf32>
    %25 = arith.mulf %24, %21 : vector<16x128xf32>
    %26 = arith.select %23, %21, %25 : vector<16x128xi1>, vector<16x128xf32>
    %c0_11 = arith.constant 0 : index
    %c0_12 = arith.constant 0 : index
    %27 = vector.load %arg3[%c0_11, %c0_12] : memref<128x96xf32, #tpu.memory_space<vmem>>, vector<128x96xf32>
    %cst_13 = arith.constant dense<0.000000e+00> : vector<16x96xf32>
    %28 = tpu.matmul %26, %27, %cst_13 {dimension_numbers = #tpu.dot_dimension_numbers<[1], [0], [0], [1], [0, 0, 1, 1], [], []>} : vector<16x128xf32>, vector<128x96xf32>, vector<16x96xf32> -> vector<16x96xf32>
    %29 = vector.shape_cast %28 : vector<16x96xf32> to vector<2x8x96xf32>
    %cst_14 = arith.constant dense<0.000000e+00> : vector<2x96xf32>
    %30 = vector.multi_reduction <add>, %29, %cst_14 [1] : vector<2x8x96xf32> to vector<2x96xf32>
    %31 = vector.shape_cast %30 : vector<2x96xf32> to vector<2x1x96xf32>
    %cst_15 = arith.constant 1.250000e-01 : f32
    %32 = vector.broadcast %cst_15 : f32 to vector<2x1x96xf32>
    %33 = arith.mulf %31, %32 : vector<2x1x96xf32>
    %34 = vector.broadcast %33 : vector<2x1x96xf32> to vector<2x8x96xf32>
    %35 = arith.subf %29, %34 : vector<2x8x96xf32>
    %36 = arith.mulf %35, %35 : vector<2x8x96xf32>
    %cst_16 = arith.constant dense<0.000000e+00> : vector<2x96xf32>
    %37 = vector.multi_reduction <add>, %36, %cst_16 [1] : vector<2x8x96xf32> to vector<2x96xf32>
    %38 = vector.shape_cast %37 : vector<2x96xf32> to vector<2x1x96xf32>
    %cst_17 = arith.constant 1.250000e-01 : f32
    %39 = vector.broadcast %cst_17 : f32 to vector<2x1x96xf32>
    %40 = arith.mulf %38, %39 : vector<2x1x96xf32>
    %cst_18 = arith.constant 9.99999974E-6 : f32
    %41 = vector.broadcast %cst_18 : f32 to vector<2x1x96xf32>
    %42 = arith.addf %40, %41 : vector<2x1x96xf32>
    %43 = math.rsqrt %42 : vector<2x1x96xf32>
    %44 = vector.broadcast %43 : vector<2x1x96xf32> to vector<2x8x96xf32>
    %45 = arith.mulf %35, %44 : vector<2x8x96xf32>
    %46 = vector.shape_cast %45 : vector<2x8x96xf32> to vector<16x96xf32>
    %cst_19 = arith.constant 0.000000e+00 : f32
    %47 = vector.broadcast %cst_19 : f32 to vector<16x96xf32>
    %48 = arith.cmpf oge, %46, %47 : vector<16x96xf32>
    %cst_20 = arith.constant 1.000000e-01 : f32
    %49 = vector.broadcast %cst_20 : f32 to vector<16x96xf32>
    %50 = arith.mulf %49, %46 : vector<16x96xf32>
    %51 = arith.select %48, %46, %50 : vector<16x96xi1>, vector<16x96xf32>
    %c0_21 = arith.constant 0 : index
    %c0_22 = arith.constant 0 : index
    %52 = vector.load %arg4[%c0_21, %c0_22] : memref<96x128xf32, #tpu.memory_space<vmem>>, vector<96x128xf32>
    %cst_23 = arith.constant dense<0.000000e+00> : vector<16x128xf32>
    %53 = tpu.matmul %51, %52, %cst_23 {dimension_numbers = #tpu.dot_dimension_numbers<[1], [0], [0], [1], [0, 0, 1, 1], [], []>} : vector<16x96xf32>, vector<96x128xf32>, vector<16x128xf32> -> vector<16x128xf32>
    %c0_24 = arith.constant 0 : index
    %c0_25 = arith.constant 0 : index
    %54 = vector.load %arg5[%c0_24, %c0_25] : memref<1x128xf32, #tpu.memory_space<vmem>>, vector<1x128xf32>
    %55 = vector.broadcast %54 : vector<1x128xf32> to vector<16x128xf32>
    %56 = arith.addf %53, %55 : vector<16x128xf32>
    %57 = vector.shape_cast %56 : vector<16x128xf32> to vector<2x8x128xf32>
    %c0_26 = arith.constant 0 : index
    %c0_27 = arith.constant 0 : index
    %c0_28 = arith.constant 0 : index
    %58 = vector.load %arg6[%c0_26, %c0_27, %c0_28] : memref<2x8x128xf32, #tpu.memory_space<vmem>>, vector<2x8x128xf32>
    tpu.vector_store %arg6[%c0_26, %c0_27, %c0_28], %57 {strides = array<i32>} : memref<2x8x128xf32, #tpu.memory_space<vmem>>, vector<2x8x128xf32>,
    return
  }
  func.func @transform_0(%arg0: i32) -> (i32, i32, i32) {
    %c0_i32 = arith.constant 0 : i32
    %c0_i32_0 = arith.constant 0 : i32
    %c0_i32_1 = arith.constant 0 : i32
    %c0_i32_2 = arith.constant 0 : i32
    return %c0_i32, %c0_i32_0, %c0_i32_1 : i32, i32, i32
  }
  func.func @transform_1(%arg0: i32) -> (i32, i32) {
    %c0_i32 = arith.constant 0 : i32
    %c0_i32_0 = arith.constant 0 : i32
    %c0_i32_1 = arith.constant 0 : i32
    return %c0_i32, %c0_i32_0 : i32, i32
  }
  func.func @transform_2(%arg0: i32) -> (i32, i32) {
    %c0_i32 = arith.constant 0 : i32
    %c0_i32_0 = arith.constant 0 : i32
    %c0_i32_1 = arith.constant 0 : i32
    return %c0_i32, %c0_i32_0 : i32, i32
  }
  func.func @transform_3(%arg0: i32) -> (i32, i32) {
    %c0_i32 = arith.constant 0 : i32
    %c0_i32_0 = arith.constant 0 : i32
    %c0_i32_1 = arith.constant 0 : i32
    return %c0_i32, %c0_i32_0 : i32, i32
  }
  func.func @transform_4(%arg0: i32) -> (i32, i32) {
    %c0_i32 = arith.constant 0 : i32
    %c0_i32_0 = arith.constant 0 : i32
    %c0_i32_1 = arith.constant 0 : i32
    return %c0_i32, %c0_i32_0 : i32, i32
  }
  func.func @transform_5(%arg0: i32) -> (i32, i32, i32) {
    %c0_i32 = arith.constant 0 : i32
    %c0_i32_0 = arith.constant 0 : i32
    %c0_i32_1 = arith.constant 0 : i32
    %c0_i32_2 = arith.constant 0 : i32
    return %c0_i32, %c0_i32_0, %c0_i32_1 : i32, i32, i32
  }
}

</mosaic_0001>

<bundles_post_ra>
// kernel: decoder_forward.1
= control target key start
LH: loop header
LB: loop body
LE: loop exit
PB: predicated region body
PF: predicated region fallthrough
CT: control target
= control target key end

     0   :  { %vm30_vm0 = vcmask 523264   ;;  %vm247_vm3 = vcmask 785408   ;;  %s771_s1 = inlined_call_operand.vmem [shape: f32[64,128], index: 1, kind: input, shape index: {}]   ;;  %s772_s0 = inlined_call_operand.vmem [shape: f32[2,8,64], index: 0, kind: input, shape index: {}]   ;;  %s773_s2 = inlined_call_operand.vmem [shape: f32[128,96], index: 2, kind: input, shape index: {}]   ;;  %s774_s3 = inlined_call_operand.vmem [shape: f32[96,128], index: 3, kind: input, shape index: {}]   ;;  %s775_s4 = inlined_call_operand.vmem [shape: f32[1,128], index: 4, kind: input, shape index: {}]   ;;  %s776_s5 = inlined_call_operand.vmem [shape: f32[2,8,128], index: 5, kind: output, shape index: {}]  }
   0x1   :  { %v22_v0 = vld [vmem:[%s771_s1] sm:$0xff]  ;;  %v23_v1 = vld [vmem:[%s771_s1 + $0x8] sm:$0xff]  ;;  %v24_v2 = vld [vmem:[%s771_s1 + $0x10] sm:$0xff] }
   0x2   :  { %v530_v3 = vpack.c.bf16 %v23_v1, %v22_v0  ;;  %v25_v4 = vld [vmem:[%s771_s1 + $0x18] sm:$0xff]  ;;  %v26_v6 = vld [vmem:[%s771_s1 + $0x20] sm:$0xff]  ;;  %v27_v7 = vld [vmem:[%s771_s1 + $0x28] sm:$0xff] }
   0x3   :  { %v534_v5 = vpack.c.bf16 %v25_v4, %v24_v2  ;;  %v20_v8 = vld [vmem:[%s772_s0] sm:$0xff]  ;;  %v538_v9 = vpack.c.bf16 %v27_v7, %v26_v6  ;;  %v28_v10 = vld [vmem:[%s771_s1 + $0x30] sm:$0xff]  ;;  %v29_v11 = vld [vmem:[%s771_s1 + $0x38] sm:$0xff] }
   0x4   :  { %531 = vmatprep.subr.bf16.mxu0 %v530_v3  ;;  %465 = vmatprep.mubr.msk.f32.mxu0 %vm30_vm0, %v20_v8  ;;  %v542_v12 = vpack.c.bf16 %v29_v11, %v28_v10  ;;  %v21_v13 = vld [vmem:[%s772_s0 + $0x8] sm:$0xff]  ;;  %v156_v14 = vld [vmem:[%s773_s2] sm:$0xff]  ;;  %v158_v17 = vld [vmem:[%s773_s2 + $0x10] sm:$0xff] }
   0x5   :  { %533 = vmatpush3.bf16.msra.mxu0 %v530_v3  ;;  %v157_v15 = vld [vmem:[%s773_s2 + $0x8] sm:$0xff]  ;;  %v159_v18 = vld [vmem:[%s773_s2 + $0x18] sm:$0xff]  ;;  %v160_v20 = vld [vmem:[%s773_s2 + $0x20] sm:$0xff] }
   0x6   :  { %535 = vmatprep.subr.bf16.mxu0 %v534_v5  ;;  %v546_v16 = vpack.c.bf16 %v157_v15, %v156_v14  ;;  %v550_v19 = vpack.c.bf16 %v159_v18, %v158_v17  ;;  %v161_v21 = vld [vmem:[%s773_s2 + $0x28] sm:$0xff]  ;;  %v162_v23 = vld [vmem:[%s773_s2 + $0x30] sm:$0xff]  ;;  %v163_v24 = vld [vmem:[%s773_s2 + $0x38] sm:$0xff] }
   0x7   :  { %v554_v22 = vpack.c.bf16 %v161_v21, %v160_v20  ;;  %v558_v25 = vpack.c.bf16 %v163_v24, %v162_v23  ;;  %v164_v26 = vld [vmem:[%s773_s2 + $0x40] sm:$0xff]  ;;  %v165_v27 = vld [vmem:[%s773_s2 + $0x48] sm:$0xff]  ;;  %v166_v29 = vld [vmem:[%s773_s2 + $0x50] sm:$0xff] }
   0x8   :  { %547 = vmatprep.subr.bf16.mxu1 %v546_v16  ;;  %v562_v28 = vpack.c.bf16 %v165_v27, %v164_v26  ;;  %v167_v30 = vld [vmem:[%s773_s2 + $0x58] sm:$0xff]  ;;  %v168_v32 = vld [vmem:[%s773_s2 + $0x60] sm:$0xff]  ;;  %v169_v33 = vld [vmem:[%s773_s2 + $0x68] sm:$0xff] }
   0x9   :  { %537 = vmatpush3.bf16.msra.mxu0 %v534_v5  ;;  %549 = vmatpush3.bf16.msra.mxu1 %v546_v16  ;;  %v566_v31 = vpack.c.bf16 %v167_v30, %v166_v29  ;;  %v570_v34 = vpack.c.bf16 %v169_v33, %v168_v32  ;;  %v170_v35 = vld [vmem:[%s773_s2 + $0x70] sm:$0xff]  ;;  %v171_v36 = vld [vmem:[%s773_s2 + $0x78] sm:$0xff]  ;;  %v296_v18 = vld [vmem:[%s774_s3] sm:$0xff] }
   0xa   :  { %539 = vmatprep.subr.bf16.mxu0 %v538_v9  ;;  %551 = vmatprep.subr.bf16.mxu1 %v550_v19  ;;  %v574_v37 = vpack.c.bf16 %v171_v36, %v170_v35  ;;  %v298_v21 = vld [vmem:[%s774_s3 + $0x10] sm:$0xff]  ;;  %v300_v24 = vld [vmem:[%s774_s3 + $0x20] sm:$0xff] }
   0xb   :  { %v302_v27 = vld [vmem:[%s774_s3 + $0x30] sm:$0xff]  ;;  %v304_v30 = vld [vmem:[%s774_s3 + $0x40] sm:$0xff] }
   0xc   :  { %v306_v33 = vld [vmem:[%s774_s3 + $0x50] sm:$0xff] }
   0xd   :  { %541 = vmatpush3.bf16.msra.mxu0 %v538_v9  ;;  %553 = vmatpush3.bf16.msra.mxu1 %v550_v19  ;;  %v297_v19 = vld [vmem:[%s774_s3 + $0x8] sm:$0xff] }
   0xe   :  { %543 = vmatprep.subr.bf16.mxu0 %v542_v12  ;;  %555 = vmatprep.subr.bf16.mxu1 %v554_v22  ;;  %v578_v20 = vpack.c.bf16 %v297_v19, %v296_v18 }
  0x11   :  { %545 = vmatpush3.bf16.msra.mxu0 %v542_v12  ;;  %557 = vmatpush3.bf16.msra.mxu1 %v554_v22  ;;  %v299_v22 = vld [vmem:[%s774_s3 + $0x18] sm:$0xff] }
  0x12   :  { %559 = vmatprep.subr.bf16.mxu1 %v558_v25  ;;  %579 = vmatprep.subr.bf16.mxu0 %v578_v20  ;;  %v582_v23 = vpack.c.bf16 %v299_v22, %v298_v21 }
  0x14   :  { %466 = vmatmul.mubr.msk.f32.vlgmr.msra.gmra.mrb[0].mxu0 %vm30_vm0, %v21_v13 }
  0x15   :  { %561 = vmatpush3.bf16.msra.mxu1 %v558_v25  ;;  %581 = vmatpush3.bf16.msra.mxu0 %v578_v20  ;;  %v301_v25 = vld [vmem:[%s774_s3 + $0x28] sm:$0xff]  ;;  %v404_v20 = vld [vmem:[%s775_s4] ss:$0 sm:$0xff] }
  0x16   :  { %563 = vmatprep.subr.bf16.mxu1 %v562_v28  ;;  %583 = vmatprep.subr.bf16.mxu0 %v582_v23  ;;  %v586_v26 = vpack.c.bf16 %v301_v25, %v300_v24 }
  0x19   :  { %565 = vmatpush3.bf16.msra.mxu1 %v562_v28  ;;  %585 = vmatpush3.bf16.msra.mxu0 %v582_v23  ;;  %v303_v28 = vld [vmem:[%s774_s3 + $0x38] sm:$0xff] }
  0x1a   :  { %567 = vmatprep.subr.bf16.mxu1 %v566_v31  ;;  %587 = vmatprep.subr.bf16.mxu0 %v586_v26  ;;  %v590_v29 = vpack.c.bf16 %v303_v28, %v302_v27 }
  0x1d   :  { %569 = vmatpush3.bf16.msra.mxu1 %v566_v31  ;;  %589 = vmatpush3.bf16.msra.mxu0 %v586_v26  ;;  %v305_v31 = vld [vmem:[%s774_s3 + $0x48] sm:$0xff] }
  0x1e   :  { %571 = vmatprep.subr.bf16.mxu1 %v570_v34  ;;  %591 = vmatprep.subr.bf16.mxu0 %v590_v29  ;;  %v594_v32 = vpack.c.bf16 %v305_v31, %v304_v30 }
  0x21   :  { %573 = vmatpush3.bf16.msra.mxu1 %v570_v34  ;;  %593 = vmatpush3.bf16.msra.mxu0 %v590_v29  ;;  %v307_v34 = vld [vmem:[%s774_s3 + $0x58] sm:$0xff] }
  0x22   :  { %575 = vmatprep.subr.bf16.mxu1 %v574_v37  ;;  %595 = vmatprep.subr.bf16.mxu0 %v594_v32  ;;  %v598_v35 = vpack.c.bf16 %v307_v34, %v306_v33 }
  0x25   :  { %577 = vmatpush3.bf16.msra.mxu1 %v574_v37  ;;  %597 = vmatpush3.bf16.msra.mxu0 %v594_v32 }
  0x26   :  { %599 = vmatprep.subr.bf16.mxu0 %v598_v35 }
  0x29   :  { %601 = vmatpush3.bf16.msra.mxu0 %v598_v35 }
  0xe7   :  { %v467_v38 = vpop.f32.mrb[0].mxu0 }
  0xe8   :  { %v118_v39 = vrot.slane %v467_v38, 4  ;;  %v103_v40 = vpop.f32.mrb[1].mxu0 }
  0xe9   :  { %v112_v41 = vrot.slane %v103_v40, 4 }
  0xea   :  { %v119_v42 = vadd.f32 %v467_v38, %v118_v39 }
  0xeb   :  { %v113_v43 = vadd.f32 %v112_v41, %v103_v40 }
  0xec   :  { %v120_v44 = vrot.slane %v119_v42, 2 }
  0xed   :  { %v114_v45 = vrot.slane %v113_v43, 2 }
  0xee   :  { %v121_v46 = vadd.f32 %v120_v44, %v119_v42 }
  0xef   :  { %v115_v47 = vadd.f32 %v114_v45, %v113_v43 }
  0xf0   :  { %v122_v48 = vrot.slane %v121_v46, 1 }
  0xf1   :  { %v116_v49 = vrot.slane %v115_v47, 1 }
  0xf2   :  { %v123_v50 = vadd.f32 %v122_v48, %v121_v46 }
  0xf3   :  { %v117_v51 = vadd.f32 %v116_v49, %v115_v47 }
  0xf4   :  { %v125_v52 = vmul.f32 0.125, %v123_v50 }
  0xf5   :  { %v124_v53 = vmul.f32 0.125, %v117_v51 }
  0xf6   :  { %v127_v54 = vsub.f32 %v467_v38, %v125_v52 }
  0xf7   :  { %v126_v55 = vsub.f32 %v103_v40, %v124_v53 }
  0xf8   :  { %v129_v56 = vmul.f32 %v127_v54, %v127_v54 }
  0xf9   :  { %v128_v57 = vmul.f32 %v126_v55, %v126_v55 }
  0xfa   :  { %v136_v58 = vrot.slane %v129_v56, 4 }
  0xfb   :  { %v130_v59 = vrot.slane %v128_v57, 4 }
  0xfc   :  { %v137_v60 = vadd.f32 %v136_v58, %v129_v56 }
  0xfd   :  { %v131_v61 = vadd.f32 %v130_v59, %v128_v57 }
  0xfe   :  { %v138_v62 = vrot.slane %v137_v60, 2 }
  0xff   :  { %v132_v63 = vrot.slane %v131_v61, 2 }
 0x100   :  { %v139_v0 = vadd.f32 %v138_v62, %v137_v60 }
 0x101   :  { %v133_v1 = vadd.f32 %v132_v63, %v131_v61 }
 0x102   :  { %v140_v2 = vrot.slane %v139_v0, 1 }
 0x103   :  { %v134_v3 = vrot.slane %v133_v1, 1 }
 0x104   :  { %v141_v4 = vadd.f32 %v140_v2, %v139_v0 }
 0x105   :  { %v135_v5 = vadd.f32 %v134_v3, %v133_v1 }
 0x106   :  { %v143_v6 = vmul.f32 0.125, %v141_v4 }
 0x107   :  { %v142_v7 = vmul.f32 0.125, %v135_v5 }
 0x108   :  { %v145_v8 = vadd.f32 1e-05, %v143_v6 }
 0x109   :  { %v144_v9 = vadd.f32 1e-05, %v142_v7 }
 0x10a   :  { %602 = vrsqrt.f32 %v145_v8 }
 0x10b   :  { %604 = vrsqrt.f32 %v144_v9 }
 0x114   :  { %v603_v10 = vpop.eup %602 }
 0x115   :  { %v605_v11 = vpop.eup %604  ;;  %v149_v12 = vmul.f32 %v603_v10, %v127_v54 }
 0x116   :  { %v148_v13 = vmul.f32 %v605_v11, %v126_v55 }
 0x117   :  { %v153_v14 = vmul.f32 0.1, %v149_v12  ;;  %vm151_vm2 = vcmp.ge.f32.partialorder %v149_v12, 0.0 }
 0x118   :  { %vm150_vm1 = vcmp.ge.f32.partialorder %v148_v13, 0.0  ;;  %v152_v15 = vmul.f32 0.1, %v148_v13 }
 0x119   :  { %v155_v17 = vsel %vm151_vm2, %v149_v12, %v153_v14 }
 0x11a   :  { %v154_v16 = vsel %vm150_vm1, %v148_v13, %v152_v15 }
 0x11b   :  { %500 = vmatprep.mubr.f32.mxu1 %v154_v16 }
 0x11c   :  { %501 = vmatmul.mubr.f32.vlgmr.msra.gmra.mrb[0].mxu1 %v155_v17 }
 0x1ef   :  { %v502_v36 = vpop.f32.mrb[0].mxu1 }
 0x1f0   :  { %v255_v37 = vsel %vm247_vm3, %v502_v36, 0.0  ;;  %v238_v38 = vpop.f32.mrb[1].mxu1 }
 0x1f1   :  { %v256_v39 = vrot.slane %v255_v37, 4  ;;  %v248_v40 = vsel %vm247_vm3, %v238_v38, 0.0 }
 0x1f2   :  { %v249_v41 = vrot.slane %v248_v40, 4 }
 0x1f3   :  { %v257_v42 = vadd.f32 %v256_v39, %v255_v37 }
 0x1f4   :  { %v250_v43 = vadd.f32 %v249_v41, %v248_v40 }
 0x1f5   :  { %v258_v44 = vrot.slane %v257_v42, 2 }
 0x1f6   :  { %v251_v45 = vrot.slane %v250_v43, 2 }
 0x1f7   :  { %v259_v46 = vadd.f32 %v258_v44, %v257_v42 }
 0x1f8   :  { %v252_v47 = vadd.f32 %v251_v45, %v250_v43 }
 0x1f9   :  { %v260_v48 = vrot.slane %v259_v46, 1 }
 0x1fa   :  { %v253_v49 = vrot.slane %v252_v47, 1 }
 0x1fb   :  { %v261_v50 = vadd.f32 %v260_v48, %v259_v46 }
 0x1fc   :  { %v254_v51 = vadd.f32 %v253_v49, %v252_v47 }
 0x1fd   :  { %v263_v52 = vmul.f32 0.125, %v261_v50 }
 0x1fe   :  { %v262_v53 = vmul.f32 0.125, %v254_v51 }
 0x1ff   :  { %v265_v54 = vsub.f32 %v502_v36, %v263_v52 }
 0x200   :  { %v264_v55 = vsub.f32 %v238_v38, %v262_v53 }
 0x201   :  { %v267_v56 = vmul.f32 %v265_v54, %v265_v54 }
 0x202   :  { %v266_v57 = vmul.f32 %v264_v55, %v264_v55 }
 0x203   :  { %v275_v58 = vsel %vm247_vm3, %v267_v56, 0.0 }
 0x204   :  { %v276_v59 = vrot.slane %v275_v58, 4  ;;  %v268_v60 = vsel %vm247_vm3, %v266_v57, 0.0 }
 0x205   :  { %v269_v61 = vrot.slane %v268_v60, 4 }
 0x206   :  { %v277_v62 = vadd.f32 %v276_v59, %v275_v58 }
 0x207   :  { %v270_v63 = vadd.f32 %v269_v61, %v268_v60 }
 0x208   :  { %v278_v0 = vrot.slane %v277_v62, 2 }
 0x209   :  { %v271_v1 = vrot.slane %v270_v63, 2 }
 0x20a   :  { %v279_v2 = vadd.f32 %v278_v0, %v277_v62 }
 0x20b   :  { %v272_v3 = vadd.f32 %v271_v1, %v270_v63 }
 0x20c   :  { %v280_v4 = vrot.slane %v279_v2, 1 }
 0x20d   :  { %v273_v5 = vrot.slane %v272_v3, 1 }
 0x20e   :  { %v281_v6 = vadd.f32 %v280_v4, %v279_v2 }
 0x20f   :  { %v274_v7 = vadd.f32 %v273_v5, %v272_v3 }
 0x210   :  { %v283_v8 = vmul.f32 0.125, %v281_v6 }
 0x211   :  { %v282_v9 = vmul.f32 0.125, %v274_v7 }
 0x212   :  { %v285_v10 = vadd.f32 1e-05, %v283_v8 }
 0x213   :  { %v284_v11 = vadd.f32 1e-05, %v282_v9 }
 0x214   :  { %606 = vrsqrt.f32 %v285_v10 }
 0x215   :  { %608 = vrsqrt.f32 %v284_v11 }
 0x21e   :  { %v607_v12 = vpop.eup %606 }
 0x21f   :  { %v609_v13 = vpop.eup %608  ;;  %v289_v14 = vmul.f32 %v607_v12, %v265_v54 }
 0x220   :  { %v288_v15 = vmul.f32 %v609_v13, %v264_v55 }
 0x221   :  { %v293_v16 = vmul.f32 0.1, %v289_v14  ;;  %vm291_vm5 = vcmp.ge.f32.partialorder %v289_v14, 0.0 }
 0x222   :  { %v292_v17 = vmul.f32 0.1, %v288_v15  ;;  %vm290_vm4 = vcmp.ge.f32.partialorder %v288_v15, 0.0 }
 0x223   :  { %v295_v19 = vsel %vm291_vm5, %v289_v14, %v293_v16 }
 0x224   :  { %v294_v18 = vsel %vm290_vm4, %v288_v15, %v292_v17 }
 0x225   :  { %527 = vmatprep.mubr.msk.f32.mxu0 %vm247_vm3, %v294_v18 }
 0x226   :  { %528 = vmatmul.mubr.msk.f32.vlgmr.msra.gmra.mrb[2].mxu0 %vm247_vm3, %v295_v19 }
 0x2f9   :  { %v529_v21 = vpop.f32.mrb[2].mxu0 }
 0x2fa   :  { %v393_v22 = vadd.f32 %v529_v21, %v404_v20  ;;  %v387_v23 = vpop.f32.mrb[3].mxu0 }
 0x2fb   :  { %v388_v24 = vadd.f32 %v404_v20, %v387_v23 }
 0x2fc   :  { %397 = vst [vmem:[%s776_s5 + $0x8] sm:$0xff] %v393_v22 }
 0x2fd   :  { %396 = vst [vmem:[%s776_s5] sm:$0xff] %v388_v24 }

</bundles_post_ra>
